<compile_context>
chip_gen: v6e
topology: v6e:2x2x1
jax: 0.10.0
libtpu: 0.0.40
codegen_flags: <defaults>
</compile_context>

<pallas_src>
import math
import functools

import jax
import jax.numpy as jnp
from jax import lax
from jax.experimental import pallas as pl
from jax.experimental.pallas import tpu as pltpu


# ---------------------------------------------------------------------------
# Tiling configuration.
# Tile sizes are derived from a ~20 MiB streaming-tile budget so the
# double-buffered working set stays comfortably under the 32 MiB scoped-VMEM
# limit below on every generation (v7x physical VMEM is only 64 MiB).
# ---------------------------------------------------------------------------
_VMEM_TILE_BUDGET = 20 * 1024 * 1024
_VMEM_LIMIT_BYTES = 32 * 1024 * 1024
_MAX_TILE_NC = 8192     # class-dimension tile cap (lane-aligned)
_MAX_TILE_K = 4096      # backbone reduction-dimension tile cap
_MAX_TILE_B = 256       # batch tile cap (MXU height on v6e/v7x)


def _round_up(v, m):
    return ((v + m - 1) // m) * m


def _round_down_min(v, m):
    return max(m, (v // m) * m)


# ----------------------------------------------------------------------------
# Kernel 1: backbone (flatten -> linear -> bias -> ReLU) + L2-normalization,
# K-tiled with a resident f32 accumulator.
# ----------------------------------------------------------------------------
def _backbone_kernel(x_ref, wb_ref, bb_ref, emb_ref, acc_ref):
    k = pl.program_id(1)

    @pl.when(k == 0)
    def _init():
        acc_ref[...] = jnp.zeros_like(acc_ref)

    # f32 tiles stream in; cast to bf16 in-register for the MXU (no wrapper-side
    # cast pass over HBM), accumulate in f32.
    acc_ref[...] += jnp.dot(
        x_ref[...].astype(jnp.bfloat16),
        wb_ref[...].astype(jnp.bfloat16),
        preferred_element_type=jnp.float32)

    @pl.when(k == pl.num_programs(1) - 1)
    def _finalize():
        emb = jnp.maximum(acc_ref[...] + bb_ref[...], 0.0)
        emb_n = emb * lax.rsqrt(jnp.sum(emb * emb, axis=-1, keepdims=True) + 1e-12)
        emb_ref[...] = emb_n.astype(emb_ref.dtype)


# ----------------------------------------------------------------------------
# Kernel 2: cosine classifier tile (weight normalization fused in-tile),
# optionally fused with the ArcFace margin.
# ----------------------------------------------------------------------------
def _normalized_cos_tile(emb_ref, wc_ref):
    # In-tile classifier-weight L2-normalization (VPU/XLU work, hidden under the
    # MXU slot) + bf16 cast; dot_general contracts axis 1 of both operands so the
    # transposed RHS feeds the MXU directly (no .T / relayout).
    wc = wc_ref[...]                                           # (tile_nc, E) f32
    wcn = (wc * lax.rsqrt(jnp.sum(wc * wc, axis=-1, keepdims=True) + 1e-12)
           ).astype(jnp.bfloat16)
    emb = emb_ref[...].astype(jnp.bfloat16)                    # (tile_b, E)
    return lax.dot_general(
        emb, wcn,
        dimension_numbers=(((1,), (1,)), ((), ())),
        preferred_element_type=jnp.float32)                    # (tile_b, tile_nc) f32


def _classifier_kernel(emb_ref, wc_ref, out_ref):
    out_ref[...] = _normalized_cos_tile(emb_ref, wc_ref)


def _classifier_arcface_kernel(labels_ref, emb_ref, wc_ref, out_ref, *, s, m):
    cos = _normalized_cos_tile(emb_ref, wc_ref)                # (tile_b, tile_nc) f32

    cos_m = math.cos(m)
    sin_m = math.sin(m)
    th = math.cos(math.pi - m)
    mm = math.sin(math.pi - m) * m

    sine = jnp.sqrt(jnp.clip(1.0 - cos * cos, 0.0, 1.0))
    phi = cos * cos_m - sine * sin_m                           # cos(theta + m)
    phi = jnp.where(cos > th, phi, cos - mm)                   # easy_margin=False path

    tb, tnc = cos.shape
    j = pl.program_id(0)                                       # class-tile index
    class_ids = j * tnc + lax.broadcasted_iota(jnp.int32, (tb, tnc), 1)
    onehot = class_ids == labels_ref[...]                      # labels: (tile_b, 1)
    out_ref[...] = s * jnp.where(onehot, phi, cos)


# ----------------------------------------------------------------------------
# Wrapper: FaceModel.forward
# ----------------------------------------------------------------------------
def face_model_forward(x, params, labels=None, *, s=30.0, m=0.5):
    """x: (B, C, H, W) f32, labels: optional (B,) int32."""
    B = x.shape[0]
    x_flat = x.reshape(B, -1).astype(jnp.float32)
    wb = params["wb"].astype(jnp.float32)
    bb = params["bb"].astype(jnp.float32)
    wc = params["wc"].astype(jnp.float32)
    F_, E = wb.shape
    NC = wc.shape[0]

    # ---- batch tiling: >= 8 sublane rows, multiple of the batch tile ------
    tile_b = min(_MAX_TILE_B, _round_up(B, 8))
    B_pad = _round_up(B, tile_b)
    grid_b = B_pad // tile_b

    # ---- backbone K (flattened-feature) tiling -----------------------------
    per_k = 2 * tile_b * 4 + 2 * E * 4           # dbl-buffered x(f32) col + wb(f32) row
    tile_k = min(_MAX_TILE_K,
                 _round_down_min(_VMEM_TILE_BUDGET // per_k, 128),
                 _round_up(F_, 128))
    F_pad = _round_up(F_, tile_k)
    grid_k = F_pad // tile_k

    # ---- classifier class-dimension tiling ---------------------------------
    per_nc = 2 * E * 4 + 2 * tile_b * 4          # dbl-buffered wc(f32) row + out(f32) col
    tile_nc = min(_MAX_TILE_NC,
                  _round_down_min(_VMEM_TILE_BUDGET // per_nc, 128),
                  _round_up(NC, 128))
    if NC >= 256:
        # keep >= 2 class tiles so both v7x TensorCores get work
        tile_nc = min(tile_nc, _round_down_min(_round_up(NC, 128) // 2, 128))
    NC_pad = _round_up(NC, tile_nc)
    grid_nc = NC_pad // tile_nc

    # ---- zero padding (no-ops when shapes are already tile multiples) ------
    if B_pad != B:
        x_flat = jnp.pad(x_flat, ((0, B_pad - B), (0, 0)))
    if F_pad != F_:
        x_flat = jnp.pad(x_flat, ((0, 0), (0, F_pad - F_)))
        wb = jnp.pad(wb, ((0, F_pad - F_), (0, 0)))
    if NC_pad != NC:
        wc = jnp.pad(wc, ((0, NC_pad - NC), (0, 0)))
    bb2d = bb.reshape(1, E)

    # --- backbone: linear -> bias -> ReLU -> L2-normalize -------------------
    emb_n = pl.pallas_call(
        _backbone_kernel,
        out_shape=jax.ShapeDtypeStruct((B_pad, E), jnp.float32),
        grid=(grid_b, grid_k),
        in_specs=[
            pl.BlockSpec((tile_b, tile_k), lambda b, k: (b, k)),
            pl.BlockSpec((tile_k, E), lambda b, k: (k, 0)),
            pl.BlockSpec((1, E), lambda b, k: (0, 0)),
        ],
        out_specs=pl.BlockSpec((tile_b, E), lambda b, k: (b, 0)),
        scratch_shapes=[pltpu.VMEM((tile_b, E), jnp.float32)],
        compiler_params=pltpu.CompilerParams(
            dimension_semantics=("parallel", "arbitrary"),
            vmem_limit_bytes=_VMEM_LIMIT_BYTES),
    )(x_flat, wb, bb2d)

    # --- classifier (+ fused ArcFace margin), tiled over classes & batch ----
    # wc's index_map is independent of the (inner) batch axis, so each class
    # tile is DMA'd once and stays resident while batch tiles stream past it.
    emb_spec = pl.BlockSpec((tile_b, E), lambda j, b: (b, 0))
    wc_spec = pl.BlockSpec((tile_nc, E), lambda j, b: (j, 0))
    out_spec = pl.BlockSpec((tile_b, tile_nc), lambda j, b: (b, j))  # lane-dense tile
    cparams = pltpu.CompilerParams(
        dimension_semantics=("parallel", "parallel"),
        vmem_limit_bytes=_VMEM_LIMIT_BYTES)

    if labels is None:
        out = pl.pallas_call(
            _classifier_kernel,
            out_shape=jax.ShapeDtypeStruct((B_pad, NC_pad), jnp.float32),
            grid=(grid_nc, grid_b),
            in_specs=[emb_spec, wc_spec],
            out_specs=out_spec,
            compiler_params=cparams,
        )(emb_n, wc)
    else:
        labels2d = jnp.pad(labels.astype(jnp.int32), (0, B_pad - B),
                           constant_values=-1).reshape(B_pad, 1)
        lbl_spec = pl.BlockSpec((tile_b, 1), lambda j, b: (b, 0))
        out = pl.pallas_call(
            functools.partial(_classifier_arcface_kernel, s=s, m=m),
            out_shape=jax.ShapeDtypeStruct((B_pad, NC_pad), jnp.float32),
            grid=(grid_nc, grid_b),
            in_specs=[lbl_spec, emb_spec, wc_spec],
            out_specs=out_spec,
            compiler_params=cparams,
        )(labels2d, emb_n, wc)

    return out[:B, :NC]


# ----------------------------------------------------------------------------
# Pure-JAX reference (loose sanity check; matmuls in f32).
# ----------------------------------------------------------------------------
def _reference_forward(x, params, labels=None, *, s=30.0, m=0.5):
    B = x.shape[0]
    x_flat = x.reshape(B, -1).astype(jnp.float32)
    wb, bb, wc = params["wb"], params["bb"], params["wc"]
    emb = jnp.maximum(x_flat @ wb + bb.reshape(1, -1), 0.0)
    emb_n = emb / jnp.sqrt(jnp.sum(emb * emb, axis=-1, keepdims=True) + 1e-12)
    wc_n = wc / jnp.sqrt(jnp.sum(wc * wc, axis=-1, keepdims=True) + 1e-12)
    cos = emb_n @ wc_n.T
    if labels is None:
        return cos
    sine = jnp.sqrt(jnp.clip(1.0 - cos * cos, 0.0, 1.0))
    phi = cos * math.cos(m) - sine * math.sin(m)
    phi = jnp.where(cos > math.cos(math.pi - m), phi, cos - math.sin(math.pi - m) * m)
    onehot = jax.nn.one_hot(labels, cos.shape[1], dtype=jnp.bool_)
    return s * jnp.where(onehot, phi, cos)


if __name__ == "__main__":
    # Small, deterministic shapes consistent with the forward pass.
    B, C, H, W = 2, 4, 16, 16
    E, NC = 128, 128          # embedding dim / number of identity classes
    F_ = C * H * W

    key = jax.random.PRNGKey(0)
    k_x, k_wb, k_wc, k_lb = jax.random.split(key, 4)

    x = jax.random.normal(k_x, (B, C, H, W), jnp.float32)
    params = {
        "wb": jax.random.normal(k_wb, (F_, E), jnp.float32) * (1.0 / math.sqrt(F_)),
        "bb": jnp.zeros((1, E), jnp.float32),
        "wc": jax.random.normal(k_wc, (NC, E), jnp.float32) * (1.0 / math.sqrt(E)),
    }
    labels = jax.random.randint(k_lb, (B,), 0, NC, dtype=jnp.int32)

    # labels is None -> return cosine logits (classifier output)
    cos = face_model_forward(x, params, labels=None)
    # labels given -> ArcFace-margined, scaled logits
    logits = face_model_forward(x, params, labels=labels)
    jax.block_until_ready((cos, logits))

    assert cos.shape == (B, NC) and logits.shape == (B, NC)

    # Loose sanity check vs f32 reference (kernel matmul operands are bf16).
    cos_ref = _reference_forward(x, params, labels=None)
    logits_ref = _reference_forward(x, params, labels=labels)
    assert jnp.all(jnp.isfinite(cos)) and jnp.all(jnp.isfinite(logits))
    assert jnp.max(jnp.abs(cos - cos_ref)) < 3e-2
    assert jnp.max(jnp.abs(logits - logits_ref)) < 1.0

    print("KERNEL_OK")
</pallas_src>

<mosaic_0001>
module attributes {stable_mosaic.version = 11 : i64} {
  func.func @_backbone_kernel(%arg0: i32, %arg1: i32, %arg2: memref<8x1024xf32, #tpu.memory_space<vmem>>, %arg3: memref<1024x128xf32, #tpu.memory_space<vmem>>, %arg4: memref<1x128xf32, #tpu.memory_space<vmem>>, %arg5: memref<8x128xf32, #tpu.memory_space<vmem>>, %arg6: memref<8x128xf32, #tpu.memory_space<vmem>>) attributes {dimension_semantics = [#tpu.dimension_semantics<parallel>, #tpu.dimension_semantics<arbitrary>], iteration_bounds = array<i64: 1, 1>, scalar_prefetch = 0 : i64, scratch_operands = 1 : i64, tpu.core_type = #tpu.core_type<tc>, window_params = [{transform_indices = @transform_0, window_bounds = array<i64: 8, 1024>}, {transform_indices = @transform_1, window_bounds = array<i64: 1024, 128>}, {pipeline_mode = #tpu.pipeline_mode<synchronous>, transform_indices = @transform_2, window_bounds = array<i64: 1, 128>}, {transform_indices = @transform_3, window_bounds = array<i64: 8, 128>}]} {
    %c0_i32 = arith.constant 0 : i32
    %0 = arith.cmpi eq, %arg1, %c0_i32 : i32
    %1 = arith.extui %0 : i1 to i32
    %c0_i32_0 = arith.constant 0 : i32
    %2 = arith.cmpi ne, %1, %c0_i32_0 : i32
    scf.if %2 {
      %cst_10 = arith.constant 0.000000e+00 : f32
      %14 = vector.broadcast %cst_10 : f32 to vector<8x128xf32>
      %c0_11 = arith.constant 0 : index
      %c0_12 = arith.constant 0 : index
      %15 = vector.load %arg6[%c0_11, %c0_12] : memref<8x128xf32, #tpu.memory_space<vmem>>, vector<8x128xf32>
      tpu.vector_store %arg6[%c0_11, %c0_12], %14 {strides = array<i32>} : memref<8x128xf32, #tpu.memory_space<vmem>>, vector<8x128xf32>,
    } else {
    }
    %c0 = arith.constant 0 : index
    %c0_1 = arith.constant 0 : index
    %3 = vector.load %arg6[%c0, %c0_1] : memref<8x128xf32, #tpu.memory_space<vmem>>, vector<8x128xf32>
    %c0_2 = arith.constant 0 : index
    %c0_3 = arith.constant 0 : index
    %4 = vector.load %arg2[%c0_2, %c0_3] : memref<8x1024xf32, #tpu.memory_space<vmem>>, vector<8x1024xf32>
    %5 = arith.truncf %4 : vector<8x1024xf32> to vector<8x1024xbf16>
    %c0_4 = arith.constant 0 : index
    %c0_5 = arith.constant 0 : index
    %6 = vector.load %arg3[%c0_4, %c0_5] : memref<1024x128xf32, #tpu.memory_space<vmem>>, vector<1024x128xf32>
    %7 = arith.truncf %6 : vector<1024x128xf32> to vector<1024x128xbf16>
    %cst = arith.constant dense<0.000000e+00> : vector<8x128xf32>
    %8 = tpu.matmul %5, %7, %cst {dimension_numbers = #tpu.dot_dimension_numbers<[1], [0], [0], [1], [0, 0, 1, 1], [], []>} : vector<8x1024xbf16>, vector<1024x128xbf16>, vector<8x128xf32> -> vector<8x128xf32>
    %9 = arith.addf %3, %8 : vector<8x128xf32>
    %c0_6 = arith.constant 0 : index
    %c0_7 = arith.constant 0 : index
    %10 = vector.load %arg6[%c0_6, %c0_7] : memref<8x128xf32, #tpu.memory_space<vmem>>, vector<8x128xf32>
    tpu.vector_store %arg6[%c0_6, %c0_7], %9 {strides = array<i32>} : memref<8x128xf32, #tpu.memory_space<vmem>>, vector<8x128xf32>,
    %c0_i32_8 = arith.constant 0 : i32
    %11 = arith.cmpi eq, %arg1, %c0_i32_8 : i32
    %12 = arith.extui %11 : i1 to i32
    %c0_i32_9 = arith.constant 0 : i32
    %13 = arith.cmpi ne, %12, %c0_i32_9 : i32
    scf.if %13 {
      %c0_10 = arith.constant 0 : index
      %c0_11 = arith.constant 0 : index
      %14 = vector.load %arg6[%c0_10, %c0_11] : memref<8x128xf32, #tpu.memory_space<vmem>>, vector<8x128xf32>
      %c0_12 = arith.constant 0 : index
      %c0_13 = arith.constant 0 : index
      %15 = vector.load %arg4[%c0_12, %c0_13] : memref<1x128xf32, #tpu.memory_space<vmem>>, vector<1x128xf32>
      %16 = vector.broadcast %15 : vector<1x128xf32> to vector<8x128xf32>
      %17 = arith.addf %14, %16 : vector<8x128xf32>
      %cst_14 = arith.constant 0.000000e+00 : f32
      %18 = vector.broadcast %cst_14 : f32 to vector<8x128xf32>
      %19 = arith.maximumf %17, %18 : vector<8x128xf32>
      %20 = arith.mulf %19, %19 : vector<8x128xf32>
      %cst_15 = arith.constant dense<0.000000e+00> : vector<8xf32>
      %21 = vector.multi_reduction <add>, %20, %cst_15 [1] : vector<8x128xf32> to vector<8xf32>
      %22 = vector.shape_cast %21 : vector<8xf32> to vector<8x1xf32>
      %cst_16 = arith.constant 9.99999996E-13 : f32
      %23 = vector.broadcast %cst_16 : f32 to vector<8x1xf32>
      %24 = arith.addf %22, %23 : vector<8x1xf32>
      %25 = math.rsqrt %24 : vector<8x1xf32>
      %26 = vector.broadcast %25 : vector<8x1xf32> to vector<8x128xf32>
      %27 = arith.mulf %19, %26 : vector<8x128xf32>
      %c0_17 = arith.constant 0 : index
      %c0_18 = arith.constant 0 : index
      %28 = vector.load %arg5[%c0_17, %c0_18] : memref<8x128xf32, #tpu.memory_space<vmem>>, vector<8x128xf32>
      tpu.vector_store %arg5[%c0_17, %c0_18], %27 {strides = array<i32>} : memref<8x128xf32, #tpu.memory_space<vmem>>, vector<8x128xf32>,
    } else {
    }
    return
  }
  func.func @transform_0(%arg0: i32, %arg1: i32) -> (i32, i32) {
    %c0_i32 = arith.constant 0 : i32
    return %arg0, %arg1 : i32, i32
  }
  func.func @transform_1(%arg0: i32, %arg1: i32) -> (i32, i32) {
    %c0_i32 = arith.constant 0 : i32
    %c0_i32_0 = arith.constant 0 : i32
    return %arg1, %c0_i32 : i32, i32
  }
  func.func @transform_2(%arg0: i32, %arg1: i32) -> (i32, i32) {
    %c0_i32 = arith.constant 0 : i32
    %c0_i32_0 = arith.constant 0 : i32
    %c0_i32_1 = arith.constant 0 : i32
    return %c0_i32, %c0_i32_0 : i32, i32
  }
  func.func @transform_3(%arg0: i32, %arg1: i32) -> (i32, i32) {
    %c0_i32 = arith.constant 0 : i32
    %c0_i32_0 = arith.constant 0 : i32
    return %arg0, %c0_i32 : i32, i32
  }
}

</mosaic_0001>

<bundles_post_ra>
// kernel: tpu_custom_call.1
= control target key start
LH: loop header
LB: loop body
LE: loop exit
PB: predicated region body
PF: predicated region fallthrough
CT: control target
= control target key end

     0   :  { %8 = vsyncpa [#allocation4], 0  ;;  %s653_s0 = inlined_call_operand.hbm [shape: f32[8,1024], index: 0, kind: input, shape index: {}]   ;;  %s654_s1 = inlined_call_operand.hbm [shape: f32[1024,128], index: 1, kind: input, shape index: {}]   ;;  %s655_s2 = inlined_call_operand.vmem [shape: f32[1,128], index: 2, kind: input, shape index: {}]   ;;  %s656_s3 = inlined_call_operand.hbm [shape: f32[8,128], index: 3, kind: output, shape index: {}]  }
   0x1   :  { %9 = vsyncpa [#allocation7], 0 }
   0x2   :  { %10 = vsyncpa [#allocation5], 0  ;;  %s616_s12 = smov [#allocation3]   ;;  %s617_s14 = smov [#allocation6]  }
   0x3   :  { %s17_s13 = sshll.u32 %s616_s12, 4  ;;  %s26_s15 = sshll.u32 %s617_s14, 4  ;;  %s18_s13 = int_to_ptr.vmem [resolvable:$true] %s17_s13  ;;  %s27_s15 = int_to_ptr.vmem [resolvable:$true] %s26_s15 }
   0x4   :  { %s558_s16 = scalar_lea.vmem %s18_s13, 1024  ;;  %p563_p1 = scmp.lt.s32.totalorder %s18_s13, %s18_s13 }
   0x5   :  { %p559_p0 = scmp.ne.s32.totalorder %s18_s13, %s558_s16  ;;  %p564_p2 = scmp.lt.s32.totalorder %s558_s16, %s558_s16 }
   0x7   :  { %p565_p3 = por %p564_p2, %p563_p1 }
   0x9   :  { %p566_p4 = pnand %p565_p3, %p559_p0 }
   0xb   :  { %569 = shalt.err (!%p566_p4)
}
   0xc   :  { %20 = dma.hbm_to_vmem [thread:$0]  %s653_s0, 1024, %s18_s13, [#allocation4]  }
   0xd   :  { %s578_s19 = scalar_lea.vmem %s27_s15, 16384  ;;  %p583_p6 = scmp.lt.s32.totalorder %s27_s15, %s27_s15 }
   0xe   :  { %p579_p5 = scmp.ne.s32.totalorder %s27_s15, %s578_s19  ;;  %p584_p7 = scmp.lt.s32.totalorder %s578_s19, %s578_s19 }
  0x10   :  { %p585_p8 = por %p584_p7, %p583_p6 }
  0x12   :  { %p586_p9 = pnand %p585_p8, %p579_p5 }
  0x14   :  { %589 = shalt.err (!%p586_p9)
}
  0x15   :  { %s618_s20 = smov 128   ;;  %s619_s21 = smov 8  }
  0x16   :  { %32 = dma.hbm_to_vmem [thread:$0]  %s654_s1, 16384, %s27_s15, [#allocation7], %s618_s20, %s618_s20, %s619_s21  }
  0x17   :  { %610 = dma.done.wait [#allocation4], 1024  }
  0x18   :  { %611 = vsyncadd [#allocation4], 4294966272 }
  0x19   :  { %612 = dma.done.wait [#allocation7], 16384  }
  0x1a   :  { %613 = vsyncadd [#allocation7], 4294950912  ;;  %v94_v0 = vld [vmem:[#allocation6 + $0xf0] sm:$0xff]  ;;  %v95_v1 = vld [vmem:[#allocation6 + $0xf8] sm:$0xff]  ;;  %s620_s24 = smov [#allocation8]  }
  0x1b   :  { %v126_v2 = vld [vmem:[#allocation6 + $0x1f0] sm:$0xff]  ;;  %v207_v3 = vpack.c.bf16 %v95_v1, %v94_v0  ;;  %v127_v4 = vld [vmem:[#allocation6 + $0x1f8] sm:$0xff]  ;;  %v92_v11 = vld [vmem:[#allocation6 + $0xe0] sm:$0xff]  ;;  %s444_s25 = sshll.u32 %s620_s24, 4  ;;  %s445_s25 = int_to_ptr.vmem [resolvable:$true] %s444_s25 }
  0x1c   :  { %v78_v5 = vld [vmem:[#allocation6 + $0x70] sm:$0xff]  ;;  %v79_v6 = vld [vmem:[#allocation6 + $0x78] sm:$0xff]  ;;  %v223_v7 = vpack.c.bf16 %v127_v4, %v126_v2  ;;  %v93_v13 = vld [vmem:[#allocation6 + $0xe8] sm:$0xff]  ;;  %s590_s26 = scalar_lea.vmem %s445_s25, 128  ;;  %p595_p11 = scmp.lt.s32.totalorder %s445_s25, %s445_s25 }
  0x1d   :  { %v199_v8 = vpack.c.bf16 %v79_v6, %v78_v5  ;;  %v110_v9 = vld [vmem:[#allocation6 + $0x170] sm:$0xff]  ;;  %v111_v10 = vld [vmem:[#allocation6 + $0x178] sm:$0xff]  ;;  %455 = vmatprep.subr.bf16.mxu0 %v207_v3  ;;  %v124_v14 = vld [vmem:[#allocation6 + $0x1e0] sm:$0xff]  ;;  %v206_v16 = vpack.c.bf16 %v93_v13, %v92_v11  ;;  %p591_p10 = scmp.ne.s32.totalorder %s445_s25, %s590_s26  ;;  %p596_p12 = scmp.lt.s32.totalorder %s590_s26, %s590_s26 }
  0x1e   :  { %v215_v12 = vpack.c.bf16 %v111_v10, %v110_v9  ;;  %v125_v15 = vld [vmem:[#allocation6 + $0x1e8] sm:$0xff]  ;;  %477 = vmatprep.subr.bf16.mxu1 %v223_v7  ;;  %v76_v18 = vld [vmem:[#allocation6 + $0x60] sm:$0xff]  ;;  %v90_v23 = vld [vmem:[#allocation6 + $0xd0] sm:$0xff] }
  0x1f   :  { %456 = vmatpush3.bf16.msra.mxu0 %v199_v8  ;;  %v222_v17 = vpack.c.bf16 %v125_v15, %v124_v14  ;;  %v77_v19 = vld [vmem:[#allocation6 + $0x68] sm:$0xff]  ;;  %v108_v20 = vld [vmem:[#allocation6 + $0x160] sm:$0xff]  ;;  %v91_v24 = vld [vmem:[#allocation6 + $0xd8] sm:$0xff]  ;;  %p597_p13 = por %p596_p12, %p595_p11 }
  0x20   :  { %478 = vmatpush3.bf16.msra.mxu1 %v215_v12  ;;  %v198_v21 = vpack.c.bf16 %v77_v19, %v76_v18  ;;  %v109_v22 = vld [vmem:[#allocation6 + $0x168] sm:$0xff]  ;;  %457 = vmatprep.subr.bf16.mxu0 %v206_v16  ;;  %v205_v26 = vpack.c.bf16 %v91_v24, %v90_v23  ;;  %v122_v27 = vld [vmem:[#allocation6 + $0x1d0] sm:$0xff]  ;;  %v123_v28 = vld [vmem:[#allocation6 + $0x1d8] sm:$0xff] }
  0x21   :  { %479 = vmatprep.subr.bf16.mxu1 %v222_v17  ;;  %v214_v25 = vpack.c.bf16 %v109_v22, %v108_v20  ;;  %v74_v29 = vld [vmem:[#allocation6 + $0x50] sm:$0xff]  ;;  %v221_v30 = vpack.c.bf16 %v123_v28, %v122_v27  ;;  %v75_v31 = vld [vmem:[#allocation6 + $0x58] sm:$0xff]  ;;  %v88_v35 = vld [vmem:[#allocation6 + $0xc0] sm:$0xff]  ;;  %p598_p0 = pnand %p597_p13, %p591_p10 }
  0x22   :  { %v106_v32 = vld [vmem:[#allocation6 + $0x150] sm:$0xff]  ;;  %v107_v33 = vld [vmem:[#allocation6 + $0x158] sm:$0xff]  ;;  %v197_v34 = vpack.c.bf16 %v75_v31, %v74_v29  ;;  %v89_v36 = vld [vmem:[#allocation6 + $0xc8] sm:$0xff] }
  0x23   :  { %458 = vmatpush3.bf16.msra.mxu0 %v198_v21  ;;  %v120_v37 = vld [vmem:[#allocation6 + $0x1c0] sm:$0xff]  ;;  %v213_v38 = vpack.c.bf16 %v107_v33, %v106_v32  ;;  %v204_v39 = vpack.c.bf16 %v89_v36, %v88_v35  ;;  %v121_v40 = vld [vmem:[#allocation6 + $0x1c8] sm:$0xff]  ;;  %v86_v46 = vld [vmem:[#allocation6 + $0xb0] sm:$0xff] }
  0x24   :  { %480 = vmatpush3.bf16.msra.mxu1 %v214_v25  ;;  %459 = vmatprep.subr.bf16.mxu0 %v205_v26  ;;  %v72_v41 = vld [vmem:[#allocation6 + $0x40] sm:$0xff]  ;;  %v73_v42 = vld [vmem:[#allocation6 + $0x48] sm:$0xff]  ;;  %v220_v43 = vpack.c.bf16 %v121_v40, %v120_v37  ;;  %v87_v47 = vld [vmem:[#allocation6 + $0xb8] sm:$0xff] }
  0x25   :  { %481 = vmatprep.subr.bf16.mxu1 %v221_v30  ;;  %v104_v44 = vld [vmem:[#allocation6 + $0x140] sm:$0xff]  ;;  %v105_v45 = vld [vmem:[#allocation6 + $0x148] sm:$0xff]  ;;  %v118_v48 = vld [vmem:[#allocation6 + $0x1b0] sm:$0xff]  ;;  %v196_v50 = vpack.c.bf16 %v73_v42, %v72_v41  ;;  %v203_v52 = vpack.c.bf16 %v87_v47, %v86_v46 }
  0x26   :  { %v119_v49 = vld [vmem:[#allocation6 + $0x1b8] sm:$0xff]  ;;  %v212_v51 = vpack.c.bf16 %v105_v45, %v104_v44  ;;  %v70_v53 = vld [vmem:[#allocation6 + $0x30] sm:$0xff]  ;;  %v84_v58 = vld [vmem:[#allocation6 + $0xa0] sm:$0xff] }
  0x27   :  { %460 = vmatpush3.bf16.msra.mxu0 %v197_v34  ;;  %v71_v54 = vld [vmem:[#allocation6 + $0x38] sm:$0xff]  ;;  %v102_v55 = vld [vmem:[#allocation6 + $0x130] sm:$0xff]  ;;  %v219_v56 = vpack.c.bf16 %v119_v49, %v118_v48  ;;  %v85_v59 = vld [vmem:[#allocation6 + $0xa8] sm:$0xff] }
  0x28   :  { %482 = vmatpush3.bf16.msra.mxu1 %v213_v38  ;;  %461 = vmatprep.subr.bf16.mxu0 %v204_v39  ;;  %v103_v57 = vld [vmem:[#allocation6 + $0x138] sm:$0xff]  ;;  %v116_v60 = vld [vmem:[#allocation6 + $0x1a0] sm:$0xff]  ;;  %v117_v61 = vld [vmem:[#allocation6 + $0x1a8] sm:$0xff]  ;;  %v195_v62 = vpack.c.bf16 %v71_v54, %v70_v53  ;;  %v202_v0 = vpack.c.bf16 %v85_v59, %v84_v58 }
  0x29   :  { %483 = vmatprep.subr.bf16.mxu1 %v220_v43  ;;  %v211_v63 = vpack.c.bf16 %v103_v57, %v102_v55  ;;  %v68_v1 = vld [vmem:[#allocation6 + $0x20] sm:$0xff]  ;;  %v69_v2 = vld [vmem:[#allocation6 + $0x28] sm:$0xff]  ;;  %v218_v4 = vpack.c.bf16 %v117_v61, %v116_v60  ;;  %v82_v6 = vld [vmem:[#allocation6 + $0x90] sm:$0xff] }
  0x2a   :  { %v100_v3 = vld [vmem:[#allocation6 + $0x120] sm:$0xff]  ;;  %v101_v5 = vld [vmem:[#allocation6 + $0x128] sm:$0xff]  ;;  %v83_v7 = vld [vmem:[#allocation6 + $0x98] sm:$0xff]  ;;  %v194_v10 = vpack.c.bf16 %v69_v2, %v68_v1 }
  0x2b   :  { %462 = vmatpush3.bf16.msra.mxu0 %v196_v50  ;;  %v114_v8 = vld [vmem:[#allocation6 + $0x190] sm:$0xff]  ;;  %v115_v9 = vld [vmem:[#allocation6 + $0x198] sm:$0xff]  ;;  %v210_v13 = vpack.c.bf16 %v101_v5, %v100_v3  ;;  %v201_v14 = vpack.c.bf16 %v83_v7, %v82_v6  ;;  %v49_v16 = vld [vmem:[#allocation3 + $0x8] sm:$0xff] }
  0x2c   :  { %484 = vmatpush3.bf16.msra.mxu1 %v212_v51  ;;  %463 = vmatprep.subr.bf16.mxu0 %v203_v52  ;;  %v66_v11 = vld [vmem:[#allocation6 + $0x10] sm:$0xff]  ;;  %v67_v12 = vld [vmem:[#allocation6 + $0x18] sm:$0xff]  ;;  %v217_v18 = vpack.c.bf16 %v115_v9, %v114_v8  ;;  %v80_v20 = vld [vmem:[#allocation6 + $0x80] sm:$0xff]  ;;  %v57_v22 = vpack.c.bf16 %v49_v16, %v49_v16 }
  0x2d   :  { %485 = vmatprep.subr.bf16.mxu1 %v219_v56  ;;  %v98_v15 = vld [vmem:[#allocation6 + $0x110] sm:$0xff]  ;;  %v51_v17 = vld [vmem:[#allocation3 + $0x18] sm:$0xff]  ;;  %v81_v21 = vld [vmem:[#allocation6 + $0x88] sm:$0xff]  ;;  %v193_v26 = vpack.c.bf16 %v67_v12, %v66_v11 }
  0x2e   :  { %v99_v19 = vld [vmem:[#allocation6 + $0x118] sm:$0xff]  ;;  %v59_v23 = vpack.c.bf16 %v51_v17, %v51_v17  ;;  %v112_v24 = vld [vmem:[#allocation6 + $0x180] sm:$0xff]  ;;  %v113_v25 = vld [vmem:[#allocation6 + $0x188] sm:$0xff]  ;;  %288 = vmatprep.mubr.bf16.mxu0 %v57_v22  ;;  %v200_v28 = vpack.c.bf16 %v81_v21, %v80_v20 }
  0x2f   :  { %464 = vmatpush3.bf16.msra.mxu0 %v195_v62  ;;  %v209_v27 = vpack.c.bf16 %v99_v19, %v98_v15  ;;  %v64_v29 = vld [vmem:[#allocation6] sm:$0xff]  ;;  %v65_v30 = vld [vmem:[#allocation6 + $0x8] sm:$0xff]  ;;  %v216_v32 = vpack.c.bf16 %v113_v25, %v112_v24  ;;  %v158_v34 = vld [vmem:[#allocation6 + $0x2f0] sm:$0xff] }
  0x30   :  { %486 = vmatpush3.bf16.msra.mxu1 %v211_v63  ;;  %465 = vmatprep.subr.bf16.mxu0 %v202_v0  ;;  %v96_v31 = vld [vmem:[#allocation6 + $0x100] sm:$0xff]  ;;  %v97_v33 = vld [vmem:[#allocation6 + $0x108] sm:$0xff]  ;;  %v159_v35 = vld [vmem:[#allocation6 + $0x2f8] sm:$0xff]  ;;  %v192_v38 = vpack.c.bf16 %v65_v30, %v64_v29 }
  0x31   :  { %487 = vmatprep.subr.bf16.mxu1 %v218_v4  ;;  %328 = vmatprep.mubr.bf16.mxu1 %v59_v23  ;;  %v190_v36 = vld [vmem:[#allocation6 + $0x3f0] sm:$0xff]  ;;  %v191_v37 = vld [vmem:[#allocation6 + $0x3f8] sm:$0xff]  ;;  %v48_v39 = vld [vmem:[#allocation3] sm:$0xff]  ;;  %v208_v41 = vpack.c.bf16 %v97_v33, %v96_v31  ;;  %v239_v42 = vpack.c.bf16 %v159_v35, %v158_v34 }
  0x32   :  { %v50_v40 = vld [vmem:[#allocation3 + $0x10] sm:$0xff]  ;;  %v143_v44 = vld [vmem:[#allocation6 + $0x278] sm:$0xff]  ;;  %v255_v46 = vpack.c.bf16 %v191_v37, %v190_v36  ;;  %v156_v48 = vld [vmem:[#allocation6 + $0x2e0] sm:$0xff]  ;;  %v56_v50 = vpack.c.bf16 %v48_v39, %v48_v39 }
  0x33   :  { %466 = vmatpush3.bf16.msra.mxu0 %v194_v10  ;;  %v142_v43 = vld [vmem:[#allocation6 + $0x270] sm:$0xff]  ;;  %v175_v47 = vld [vmem:[#allocation6 + $0x378] sm:$0xff]  ;;  %v157_v49 = vld [vmem:[#allocation6 + $0x2e8] sm:$0xff]  ;;  %v58_v53 = vpack.c.bf16 %v50_v40, %v50_v40 }
  0x34   :  { %488 = vmatpush3.bf16.msra.mxu1 %v210_v13  ;;  %467 = vmatprep.subr.bf16.mxu0 %v201_v14  ;;  %v174_v45 = vld [vmem:[#allocation6 + $0x370] sm:$0xff]  ;;  %v188_v51 = vld [vmem:[#allocation6 + $0x3e0] sm:$0xff]  ;;  %v189_v52 = vld [vmem:[#allocation6 + $0x3e8] sm:$0xff]  ;;  %v231_v54 = vpack.c.bf16 %v143_v44, %v142_v43  ;;  %v238_v56 = vpack.c.bf16 %v157_v49, %v156_v48 }
  0x35   :  { %489 = vmatprep.subr.bf16.mxu1 %v217_v18  ;;  %v247_v55 = vpack.c.bf16 %v175_v47, %v174_v45  ;;  %v140_v57 = vld [vmem:[#allocation6 + $0x260] sm:$0xff]  ;;  %v141_v58 = vld [vmem:[#allocation6 + $0x268] sm:$0xff]  ;;  %v254_v60 = vpack.c.bf16 %v189_v52, %v188_v51  ;;  %v154_v62 = vld [vmem:[#allocation6 + $0x2d0] sm:$0xff] }
  0x36   :  { %v172_v59 = vld [vmem:[#allocation6 + $0x360] sm:$0xff]  ;;  %v173_v61 = vld [vmem:[#allocation6 + $0x368] sm:$0xff]  ;;  %v155_v63 = vld [vmem:[#allocation6 + $0x2d8] sm:$0xff]  ;;  %v230_v2 = vpack.c.bf16 %v141_v58, %v140_v57 }
  0x37   :  { %468 = vmatpush3.bf16.msra.mxu0 %v193_v26  ;;  %v186_v0 = vld [vmem:[#allocation6 + $0x3d0] sm:$0xff]  ;;  %v187_v1 = vld [vmem:[#allocation6 + $0x3d8] sm:$0xff]  ;;  %v246_v3 = vpack.c.bf16 %v173_v61, %v172_v59  ;;  %v237_v4 = vpack.c.bf16 %v155_v63, %v154_v62  ;;  %v152_v10 = vld [vmem:[#allocation6 + $0x2c0] sm:$0xff] }
  0x38   :  { %490 = vmatpush3.bf16.msra.mxu1 %v209_v27  ;;  %469 = vmatprep.subr.bf16.mxu0 %v200_v28  ;;  %v138_v5 = vld [vmem:[#allocation6 + $0x250] sm:$0xff]  ;;  %v139_v6 = vld [vmem:[#allocation6 + $0x258] sm:$0xff]  ;;  %v253_v8 = vpack.c.bf16 %v187_v1, %v186_v0  ;;  %v153_v11 = vld [vmem:[#allocation6 + $0x2c8] sm:$0xff] }
  0x39   :  { %491 = vmatprep.subr.bf16.mxu1 %v216_v32  ;;  %v170_v7 = vld [vmem:[#allocation6 + $0x350] sm:$0xff]  ;;  %v171_v9 = vld [vmem:[#allocation6 + $0x358] sm:$0xff]  ;;  %v184_v12 = vld [vmem:[#allocation6 + $0x3c0] sm:$0xff]  ;;  %v229_v14 = vpack.c.bf16 %v139_v6, %v138_v5  ;;  %v236_v17 = vpack.c.bf16 %v153_v11, %v152_v10 }
  0x3a   :  { %v185_v13 = vld [vmem:[#allocation6 + $0x3c8] sm:$0xff]  ;;  %v136_v15 = vld [vmem:[#allocation6 + $0x240] sm:$0xff]  ;;  %v245_v16 = vpack.c.bf16 %v171_v9, %v170_v7  ;;  %v150_v22 = vld [vmem:[#allocation6 + $0x2b0] sm:$0xff] }
  0x3b   :  { %470 = vmatpush3.bf16.msra.mxu0 %v192_v38  ;;  %v137_v18 = vld [vmem:[#allocation6 + $0x248] sm:$0xff]  ;;  %v168_v19 = vld [vmem:[#allocation6 + $0x340] sm:$0xff]  ;;  %v252_v21 = vpack.c.bf16 %v185_v13, %v184_v12  ;;  %v151_v23 = vld [vmem:[#allocation6 + $0x2b8] sm:$0xff] }
  0x3c   :  { %492 = vmatpush3.bf16.msra.mxu1 %v208_v41  ;;  %499 = vmatprep.subr.bf16.mxu0 %v239_v42  ;;  %v169_v20 = vld [vmem:[#allocation6 + $0x348] sm:$0xff]  ;;  %v182_v24 = vld [vmem:[#allocation6 + $0x3b0] sm:$0xff]  ;;  %v183_v25 = vld [vmem:[#allocation6 + $0x3b8] sm:$0xff]  ;;  %v228_v26 = vpack.c.bf16 %v137_v18, %v136_v15  ;;  %v235_v30 = vpack.c.bf16 %v151_v23, %v150_v22 }
  0x3d   :  { %521 = vmatprep.subr.bf16.mxu1 %v255_v46  ;;  %v244_v27 = vpack.c.bf16 %v169_v20, %v168_v19  ;;  %v53_v28 = vld [vmem:[#allocation3 + $0x28] sm:$0xff]  ;;  %v55_v29 = vld [vmem:[#allocation3 + $0x38] sm:$0xff]  ;;  %v134_v31 = vld [vmem:[#allocation6 + $0x230] sm:$0xff]  ;;  %v251_v36 = vpack.c.bf16 %v183_v25, %v182_v24 }
  0x3e   :  { %289 = vmatmul.mubr.bf16.vlgmr.msra.gmra.mxu0 %v56_v50  ;;  %v135_v32 = vld [vmem:[#allocation6 + $0x238] sm:$0xff]  ;;  %v166_v33 = vld [vmem:[#allocation6 + $0x330] sm:$0xff]  ;;  %v61_v34 = vpack.c.bf16 %v53_v28, %v53_v28  ;;  %v63_v35 = vpack.c.bf16 %v55_v29, %v55_v29  ;;  %v148_v38 = vld [vmem:[#allocation6 + $0x2a0] sm:$0xff] }
  0x3f   :  { %329 = vmatmul.mubr.bf16.vlgmr.msra.gmra.mxu1 %v58_v53  ;;  %500 = vmatpush3.bf16.msra.mxu0 %v231_v54  ;;  %v167_v37 = vld [vmem:[#allocation6 + $0x338] sm:$0xff]  ;;  %v149_v39 = vld [vmem:[#allocation6 + $0x2a8] sm:$0xff]  ;;  %v180_v40 = vld [vmem:[#allocation6 + $0x3a0] sm:$0xff]  ;;  %v227_v42 = vpack.c.bf16 %v135_v32, %v134_v31 }
  0x40   :  { %522 = vmatpush3.bf16.msra.mxu1 %v247_v55  ;;  %501 = vmatprep.subr.bf16.mxu0 %v238_v56  ;;  %v181_v41 = vld [vmem:[#allocation6 + $0x3a8] sm:$0xff]  ;;  %v243_v43 = vpack.c.bf16 %v167_v37, %v166_v33  ;;  %v234_v44 = vpack.c.bf16 %v149_v39, %v148_v38  ;;  %v132_v45 = vld [vmem:[#allocation6 + $0x220] sm:$0xff]  ;;  %v146_v50 = vld [vmem:[#allocation6 + $0x290] sm:$0xff] }
  0x41   :  { %523 = vmatprep.subr.bf16.mxu1 %v254_v60  ;;  %368 = vmatprep.mubr.bf16.mxu0 %v61_v34  ;;  %v133_v46 = vld [vmem:[#allocation6 + $0x228] sm:$0xff]  ;;  %v164_v47 = vld [vmem:[#allocation6 + $0x320] sm:$0xff]  ;;  %v250_v48 = vpack.c.bf16 %v181_v41, %v180_v40  ;;  %v147_v51 = vld [vmem:[#allocation6 + $0x298] sm:$0xff] }
  0x42   :  { %408 = vmatprep.mubr.bf16.mxu1 %v63_v35  ;;  %v165_v49 = vld [vmem:[#allocation6 + $0x328] sm:$0xff]  ;;  %v178_v52 = vld [vmem:[#allocation6 + $0x390] sm:$0xff]  ;;  %v179_v53 = vld [vmem:[#allocation6 + $0x398] sm:$0xff]  ;;  %v226_v54 = vpack.c.bf16 %v133_v46, %v132_v45  ;;  %v233_v56 = vpack.c.bf16 %v147_v51, %v146_v50 }
  0x43   :  { %502 = vmatpush3.bf16.msra.mxu0 %v230_v2  ;;  %v242_v55 = vpack.c.bf16 %v165_v49, %v164_v47  ;;  %v130_v57 = vld [vmem:[#allocation6 + $0x210] sm:$0xff]  ;;  %v131_v58 = vld [vmem:[#allocation6 + $0x218] sm:$0xff]  ;;  %v249_v60 = vpack.c.bf16 %v179_v53, %v178_v52  ;;  %v144_v62 = vld [vmem:[#allocation6 + $0x280] sm:$0xff] }
  0x44   :  { %524 = vmatpush3.bf16.msra.mxu1 %v246_v3  ;;  %503 = vmatprep.subr.bf16.mxu0 %v237_v4  ;;  %v162_v59 = vld [vmem:[#allocation6 + $0x310] sm:$0xff]  ;;  %v163_v61 = vld [vmem:[#allocation6 + $0x318] sm:$0xff]  ;;  %v145_v63 = vld [vmem:[#allocation6 + $0x288] sm:$0xff]  ;;  %v225_v2 = vpack.c.bf16 %v131_v58, %v130_v57 }
  0x45   :  { %525 = vmatprep.subr.bf16.mxu1 %v253_v8  ;;  %v176_v0 = vld [vmem:[#allocation6 + $0x380] sm:$0xff]  ;;  %v177_v1 = vld [vmem:[#allocation6 + $0x388] sm:$0xff]  ;;  %v241_v3 = vpack.c.bf16 %v163_v61, %v162_v59  ;;  %v232_v4 = vpack.c.bf16 %v145_v63, %v144_v62  ;;  %v54_v13 = vld [vmem:[#allocation3 + $0x30] sm:$0xff] }
  0x46   :  { %v128_v5 = vld [vmem:[#allocation6 + $0x200] sm:$0xff]  ;;  %v129_v6 = vld [vmem:[#allocation6 + $0x208] sm:$0xff]  ;;  %v248_v7 = vpack.c.bf16 %v177_v1, %v176_v0  ;;  %v62_v15 = vpack.c.bf16 %v54_v13, %v54_v13 }
  0x47   :  { %504 = vmatpush3.bf16.msra.mxu0 %v229_v14  ;;  %v160_v8 = vld [vmem:[#allocation6 + $0x300] sm:$0xff]  ;;  %v161_v9 = vld [vmem:[#allocation6 + $0x308] sm:$0xff]  ;;  %v224_v10 = vpack.c.bf16 %v129_v6, %v128_v5 }
  0x48   :  { %526 = vmatpush3.bf16.msra.mxu1 %v245_v16  ;;  %505 = vmatprep.subr.bf16.mxu0 %v236_v17  ;;  %v52_v11 = vld [vmem:[#allocation3 + $0x20] sm:$0xff]  ;;  %v240_v12 = vpack.c.bf16 %v161_v9, %v160_v8 }
  0x49   :  { %527 = vmatprep.subr.bf16.mxu1 %v252_v21  ;;  %v60_v14 = vpack.c.bf16 %v52_v11, %v52_v11  ;;  %v454_v37 = vld [vmem:[%s655_s2] ss:$0 sm:$0xff] }
  0x4b   :  { %506 = vmatpush3.bf16.msra.mxu0 %v228_v26 }
  0x4c   :  { %528 = vmatpush3.bf16.msra.mxu1 %v244_v27  ;;  %507 = vmatprep.subr.bf16.mxu0 %v235_v30 }
  0x4d   :  { %529 = vmatprep.subr.bf16.mxu1 %v251_v36 }
  0x4f   :  { %508 = vmatpush3.bf16.msra.mxu0 %v227_v42 }
  0x50   :  { %530 = vmatpush3.bf16.msra.mxu1 %v243_v43  ;;  %509 = vmatprep.subr.bf16.mxu0 %v234_v44 }
  0x51   :  { %531 = vmatprep.subr.bf16.mxu1 %v250_v48 }
  0x53   :  { %510 = vmatpush3.bf16.msra.mxu0 %v226_v54 }
  0x54   :  { %532 = vmatpush3.bf16.msra.mxu1 %v242_v55  ;;  %511 = vmatprep.subr.bf16.mxu0 %v233_v56 }
  0x55   :  { %533 = vmatprep.subr.bf16.mxu1 %v249_v60 }
  0x57   :  { %512 = vmatpush3.bf16.msra.mxu0 %v225_v2 }
  0x58   :  { %534 = vmatpush3.bf16.msra.mxu1 %v241_v3  ;;  %513 = vmatprep.subr.bf16.mxu0 %v232_v4 }
  0x59   :  { %535 = vmatprep.subr.bf16.mxu1 %v248_v7 }
  0x5b   :  { %514 = vmatpush3.bf16.msra.mxu0 %v224_v10 }
  0x5c   :  { %536 = vmatpush3.bf16.msra.mxu1 %v240_v12 }
  0x5e   :  { %369 = vmatmul.mubr.bf16.vlgmr.msra.gmra.mxu0 %v60_v14 }
  0x5f   :  { %409 = vmatmul.mubr.bf16.vlgmr.msra.gmra.mxu1 %v62_v15 }
  0xfe   :  { %v471_v16 = vpop.f32.mrf.mxu0 }
  0xff   :  { %v493_v17 = vpop.f32.mrf.mxu1 }
 0x100   :  { %v472_v18 = vpop.f32.mrf.mxu0 }
 0x101   :  { %v494_v19 = vpop.f32.mrf.mxu1  ;;  %v473_v24 = vadd.f32 %v472_v18, %v471_v16 }
 0x102   :  { %v474_v20 = vpop.f32.mrf.mxu0  ;;  %v495_v25 = vadd.f32 %v494_v19, %v493_v17 }
 0x103   :  { %v496_v21 = vpop.f32.mrf.mxu1 }
 0x104   :  { %v475_v22 = vpop.f32.mrf.mxu0  ;;  %v331_v29 = vadd.f32 %v495_v25, %v473_v24 }
 0x105   :  { %v497_v23 = vpop.f32.mrf.mxu1 }
 0x11e   :  { %v515_v26 = vpop.f32.mrf.mxu0 }
 0x11f   :  { %v537_v27 = vpop.f32.mrf.mxu1 }
 0x120   :  { %v516_v28 = vpop.f32.mrf.mxu0 }
 0x121   :  { %v517_v30 = vadd.f32 %v516_v28, %v515_v26  ;;  %v538_v31 = vpop.f32.mrf.mxu1 }
 0x122   :  { %v518_v32 = vpop.f32.mrf.mxu0  ;;  %v539_v34 = vadd.f32 %v538_v31, %v537_v27 }
 0x123   :  { %v371_v33 = vadd.f32 %v517_v30, %v331_v29  ;;  %v540_v35 = vpop.f32.mrf.mxu1 }
 0x124   :  { %v519_v36 = vpop.f32.mrf.mxu0 }
 0x125   :  { %v411_v38 = vadd.f32 %v539_v34, %v371_v33  ;;  %v541_v39 = vpop.f32.mrf.mxu1 }
 0x127   :  { %v429_v40 = vadd.f32 %v454_v37, %v411_v38 }
 0x129   :  { %v430_v41 = vmax.f32 %v429_v40, 0.0 }
 0x12b   :  { %v431_v42 = vmul.f32 %v430_v41, %v430_v41 }
 0x12d   :  { %432 = vadd.xlane.f32.xlu0 %v431_v42 }
 0x1b6   :  { %v433_v43 = vpop.xlane.xlu0 %432 }
 0x1b7   :  { %v434_v44 = vadd.f32 1e-12, %v433_v43 }
 0x1b9   :  { %548 = vrsqrt.f32 %v434_v44 }
 0x1c6   :  { %v549_v45 = vpop.eup %548 }
 0x1c7   :  { %v436_v46 = vmul.f32 %v549_v45, %v430_v41 }
 0x1c9   :  { %437 = vst [vmem:[#allocation8] sm:$0xff] %v436_v46 }
 0x1ca   :  { %601 = shalt.err (!%p598_p0)
}
 0x1cb   :  { %447 = dma.vmem_to_hbm [thread:$0]  %s445_s25, 128, %s656_s3, [#allocation5]  }
 0x1cc   :  { %614 = dma.done.wait [#allocation5], 128  }
 0x1cd   :  { %615 = vsyncadd [#allocation5], 4294967168 }
 0x1ce   :  { %451 = vsyncpa [#allocation4], 1 }
 0x1cf   :  { %452 = vsyncpa [#allocation7], 1 }
 0x1d0   :  { %453 = vsyncpa [#allocation5], 1 }

</bundles_post_ra>
